<compile_context>
chip_gen: v7x
topology: tpu7x:2x2x1
jax: 0.10.0
libtpu: 0.0.40
codegen_flags: <defaults>
</compile_context>

<pallas_src>
import functools

import jax
import jax.numpy as jnp
import numpy as np
from jax.experimental import pallas as pl
from jax.experimental.pallas import tpu as pltpu


def _influence_kernel(e_ref, p_ref, iu_ref, w_ref, b_ref, out_ref, *, n_valid):
    """One batch tile of InfluenceProp.

    e_ref   (TB*Np, D) bf16  gathered user embeddings  (act_emb rows)
    p_ref   (TB*Np, D) bf16  gathered user profiles    (act_prof rows)
    iu_ref  (2, TB, D) bf16  [0]=item embeddings, [1]=user embeddings
    w_ref   (7, D, D)  f32   [wf_e, wf_p, wc1_t, wc1_b, wc2, wa1_t, wa1_b]
    b_ref   (6, D)     f32   [bf, bc1, bc2, ba1, wa2, ba2(broadcast)]
    out_ref (TB, D+Np) f32   [:, :D] = combined feature, [:, D:] = attention
    """
    R, D = e_ref.shape
    TB = iu_ref.shape[1]
    Np = R // TB
    f32 = jnp.float32
    relu = lambda v: jnp.maximum(v, 0.0)

    bf = b_ref[0:1, :]
    bc1 = b_ref[1:2, :]
    bc2 = b_ref[2:3, :]
    ba1 = b_ref[3:4, :]
    wa2 = b_ref[4:5, :]
    ba2 = b_ref[5:6, 0:1]                    # (1, 1)

    e = e_ref[...]                           # (R, D) bf16
    p = p_ref[...]                           # (R, D) bf16
    ie = iu_ref[0]                           # (TB, D) bf16
    ue = iu_ref[1]                           # (TB, D) bf16

    # fusion(e, p) = relu(e @ Wf_e + p @ Wf_p + bf)   -- two K=D dots, no concat
    fused = relu(jnp.dot(e, w_ref[0], preferred_element_type=f32)
                 + jnp.dot(p, w_ref[1], preferred_element_type=f32) + bf)    # (R, D)

    # c1 = relu(w_c1([fused | item_emb.repeat]));  item term added on the 3D view
    i_term = jnp.dot(ie, w_ref[3], preferred_element_type=f32)               # (TB, D)
    c1 = relu(jnp.dot(fused, w_ref[2], preferred_element_type=f32)
              .reshape(TB, Np, D) + i_term[:, None, :] + bc1).reshape(R, D)

    c2 = relu(jnp.dot(c1, w_ref[4], preferred_element_type=f32) + bc2)       # (R, D)

    # attention logits: relu(w_a1([c2 | u_emb.repeat])) . wa2 + ba2
    u_term = jnp.dot(ue, w_ref[6], preferred_element_type=f32)               # (TB, D)
    s1 = relu(jnp.dot(c2, w_ref[5], preferred_element_type=f32)
              .reshape(TB, Np, D) + u_term[:, None, :] + ba1)                # (TB, Np, D)

    # TODO(synk): this D-length reduce could be an MXU matvec vs a (D,1) wa2
    # column; kept as a lane reduce to avoid the (R,1)->(TB,Np) relayout since
    # the kernel is HBM-stream bound and MXU slack is unused either way.
    scores = jnp.sum(s1 * wa2, axis=-1) + ba2                                # (TB, Np)
    if n_valid < Np:  # static predicate: mask padded users out of the softmax
        lane = jax.lax.broadcasted_iota(jnp.int32, (TB, Np), 1)
        scores = jnp.where(lane < n_valid, scores, -jnp.inf)
    scores = scores - jnp.max(scores, axis=-1, keepdims=True)
    ex = jnp.exp(scores)
    denom = jnp.sum(ex, axis=-1, keepdims=True)                              # (TB, 1)
    r = pl.reciprocal(denom, approx=True)
    r = r * (2.0 - denom * r)                # one Newton step -> ~f32 accuracy
    att = ex * r                                                             # (TB, Np)

    # combined[b] = c2[b].T @ att[b] == sum_n c2[b,n,:] * att[b,n]
    combined = jnp.sum(c2.reshape(TB, Np, D) * att[:, :, None], axis=1)      # (TB, D)

    out_ref[:, 0:D] = combined.astype(out_ref.dtype)
    out_ref[:, D:D + Np] = att.astype(out_ref.dtype)


def _vmem_block_bytes(TB, Np, D):
    """Rough per-step VMEM footprint: double-buffered blocks + live f32 temps."""
    R = TB * Np
    act = 2 * R * D * 2                      # e + p blocks (bf16)
    iu = 2 * TB * D * 2                      # item/user embedding block (bf16)
    params = (7 * D * D + 6 * D) * 4         # resident weights/biases (f32)
    out = TB * (D + Np) * 4
    live = 8 * R * D * 4                     # ~peak (R, D) f32 intermediates
    return 2 * (act + iu + params + out) + live


def _pick_batch_tile(B, Np, D, batch_tile):
    # Conservative cross-chip budget (v7x: 64 MiB physical / 32 MiB scoped default).
    budget = 24 * 1024 * 1024
    if B <= batch_tile and _vmem_block_bytes(B, Np, D) <= budget:
        return B, B                          # single step, full-extent blocks
    align = 16                               # bf16 sublane packing on streamed blocks
    TB = max(align, (min(batch_tile, B) // align) * align)
    while TB > align and _vmem_block_bytes(TB, Np, D) > budget:
        TB -= align
    Bp = pl.cdiv(B, TB) * TB
    return TB, Bp


def influence_prop(act_emb, act_prof, i_embs, u_embs, params, batch_tile=512):
    """act_emb/act_prof: [B,N,D]; i_embs/u_embs: [B,D]. Returns ([B,D], [B,N,1])."""
    B, N, D = act_emb.shape
    Np = ((N + 7) // 8) * 8                  # sublane-align the per-sample user axis
    TB, Bp = _pick_batch_tile(B, Np, D, batch_tile)
    CO = D + Np                              # packed output: [combined | attention]

    stream_dt = jnp.bfloat16                 # halve HBM bytes on the dominant streams

    def prep(a):                             # [B,N,D] -> [Bp*Np, D] lane-dense rows
        a = a.astype(stream_dt)
        if (Bp, Np) != (B, N):
            a = jnp.pad(a, ((0, Bp - B), (0, Np - N), (0, 0)))
        return a.reshape(Bp * Np, D)

    e_flat = prep(act_emb)
    p_flat = prep(act_prof)
    iu = jnp.stack([i_embs, u_embs], axis=0).astype(stream_dt)               # (2,B,D)
    if Bp != B:
        iu = jnp.pad(iu, ((0, 0), (0, Bp - B), (0, 0)))

    # Grid-invariant resident parameter packs (f32 for accuracy; tiny HBM cost).
    wstack = jnp.stack(
        [params[k].astype(jnp.float32) for k in
         ("wf_e", "wf_p", "wc1_t", "wc1_b", "wc2", "wa1_t", "wa1_b")], axis=0)  # (7,D,D)
    bpack = jnp.concatenate(
        [params["bf"], params["bc1"], params["bc2"], params["ba1"],
         params["wa2"], jnp.broadcast_to(params["ba2"], (1, D))],
        axis=0).astype(jnp.float32)                                            # (6,D)

    grid = (Bp // TB,)
    in_specs = [
        pl.BlockSpec((TB * Np, D), lambda b: (b, 0)),    # act_emb rows   (streamed)
        pl.BlockSpec((TB * Np, D), lambda b: (b, 0)),    # act_prof rows  (streamed)
        pl.BlockSpec((2, TB, D), lambda b: (0, b, 0)),   # item/user embs (streamed)
        pl.BlockSpec((7, D, D), lambda b: (0, 0, 0)),    # weights (grid-invariant)
        pl.BlockSpec((6, D), lambda b: (0, 0)),          # biases  (grid-invariant)
    ]
    out_specs = pl.BlockSpec((TB, CO), lambda b: (b, 0))
    out_shape = jax.ShapeDtypeStruct((Bp, CO), jnp.float32)

    est = _vmem_block_bytes(TB, Np, D)
    vmem_limit = int(min(max(2 * est, 32 * 1024 * 1024), 48 * 1024 * 1024))

    out = pl.pallas_call(
        functools.partial(_influence_kernel, n_valid=N),
        out_shape=out_shape,
        grid=grid,
        in_specs=in_specs,
        out_specs=out_specs,
        compiler_params=pltpu.CompilerParams(
            dimension_semantics=("parallel",),
            vmem_limit_bytes=vmem_limit),
    )(e_flat, p_flat, iu, wstack, bpack)

    combined = out[:B, :D]
    att = out[:B, D:D + N].reshape(B, N, 1)
    return combined, att


def reference(act_emb, act_prof, i_embs, u_embs, p):
    """Pure-jnp f32 replica of the PyTorch forward semantics (fixed N per row)."""
    relu = lambda x: jnp.maximum(x, 0.0)
    fused = relu(act_emb @ p["wf_e"] + act_prof @ p["wf_p"] + p["bf"])        # [B,N,D]
    c1 = relu(fused @ p["wc1_t"] + (i_embs @ p["wc1_b"])[:, None, :] + p["bc1"])
    c2 = relu(c1 @ p["wc2"] + p["bc2"])
    s1 = relu(c2 @ p["wa1_t"] + (u_embs @ p["wa1_b"])[:, None, :] + p["ba1"])
    scores = jnp.sum(s1 * p["wa2"], axis=-1, keepdims=True) + p["ba2"]        # [B,N,1]
    att = jax.nn.softmax(scores, axis=1)
    combined = jnp.sum(c2 * att, axis=1)                                      # [B,D]
    return combined, att


if __name__ == "__main__":
    B, N, D = 2, 8, 32           # batch, active users per sample, emb_size
    NUM_USERS = 20

    key = jax.random.PRNGKey(0)
    ks = jax.random.split(key, 20)

    # "dataset" tensors the module holds / receives
    user_embs_weight = jax.random.normal(ks[0], (NUM_USERS, D), jnp.float32)
    user_profiles = jax.random.normal(ks[1], (NUM_USERS, D), jnp.float32)
    act_users = jax.random.randint(ks[2], (B, N), 0, NUM_USERS)
    u_embs = jax.random.normal(ks[3], (B, D), jnp.float32)
    i_embs = jax.random.normal(ks[4], (B, D), jnp.float32)

    # deterministic synthetic parameters (torch-Linear shapes, stored [in,out])
    s = 0.1
    params = {
        "wf_e":  s * jax.random.normal(ks[5],  (D, D), jnp.float32),
        "wf_p":  s * jax.random.normal(ks[6],  (D, D), jnp.float32),
        "bf":    s * jax.random.normal(ks[7],  (1, D), jnp.float32),
        "wc1_t": s * jax.random.normal(ks[8],  (D, D), jnp.float32),
        "wc1_b": s * jax.random.normal(ks[9],  (D, D), jnp.float32),
        "bc1":   s * jax.random.normal(ks[10], (1, D), jnp.float32),
        "wc2":   s * jax.random.normal(ks[11], (D, D), jnp.float32),
        "bc2":   s * jax.random.normal(ks[12], (1, D), jnp.float32),
        "wa1_t": s * jax.random.normal(ks[13], (D, D), jnp.float32),
        "wa1_b": s * jax.random.normal(ks[14], (D, D), jnp.float32),
        "ba1":   jnp.zeros((1, D), jnp.float32),
        "wa2":   s * jax.random.normal(ks[15], (1, D), jnp.float32),
        "ba2":   jnp.zeros((1, 1), jnp.float32),
    }

    # glue: gather active-user embeddings / profiles (the `self.user_embs.weight[x]` step)
    act_emb = user_embs_weight[act_users]     # [B, N, D]
    act_prof = user_profiles[act_users]       # [B, N, D]

    combined, att = influence_prop(act_emb, act_prof, i_embs, u_embs, params)
    combined = jax.block_until_ready(combined)
    att = jax.block_until_ready(att)

    ref_c, ref_a = reference(act_emb, act_prof, i_embs, u_embs, params)
    # bf16-streamed activations -> relaxed tolerances vs the f32 reference.
    np.testing.assert_allclose(np.asarray(combined), np.asarray(ref_c), rtol=2e-2, atol=2e-2)
    np.testing.assert_allclose(np.asarray(att), np.asarray(ref_a), rtol=2e-2, atol=2e-2)

    # Second check: multi-step grid + batch padding + N padded to 8 with softmax masking.
    B2, N2 = 40, 5
    act_users2 = jax.random.randint(ks[16], (B2, N2), 0, NUM_USERS)
    u_embs2 = jax.random.normal(ks[17], (B2, D), jnp.float32)
    i_embs2 = jax.random.normal(ks[18], (B2, D), jnp.float32)
    act_emb2 = user_embs_weight[act_users2]
    act_prof2 = user_profiles[act_users2]

    c2_out, a2_out = influence_prop(act_emb2, act_prof2, i_embs2, u_embs2, params,
                                    batch_tile=16)
    c2_out = jax.block_until_ready(c2_out)
    a2_out = jax.block_until_ready(a2_out)
    r2_c, r2_a = reference(act_emb2, act_prof2, i_embs2, u_embs2, params)
    np.testing.assert_allclose(np.asarray(c2_out), np.asarray(r2_c), rtol=2e-2, atol=2e-2)
    np.testing.assert_allclose(np.asarray(a2_out), np.asarray(r2_a), rtol=2e-2, atol=2e-2)

    print("KERNEL_OK")
</pallas_src>

<mosaic_0001>
module attributes {stable_mosaic.version = 11 : i64} {
  func.func @_influence_kernel(%arg0: i32, %arg1: memref<16x32xbf16, #tpu.memory_space<vmem>>, %arg2: memref<16x32xbf16, #tpu.memory_space<vmem>>, %arg3: memref<2x2x32xbf16, #tpu.memory_space<vmem>>, %arg4: memref<7x32x32xf32, #tpu.memory_space<vmem>>, %arg5: memref<6x32xf32, #tpu.memory_space<vmem>>, %arg6: memref<2x40xf32, #tpu.memory_space<vmem>>) attributes {dimension_semantics = [#tpu.dimension_semantics<parallel>], iteration_bounds = array<i64: 1>, scalar_prefetch = 0 : i64, scratch_operands = 0 : i64, tpu.core_type = #tpu.core_type<tc>, window_params = [{transform_indices = @transform_0, window_bounds = array<i64: 16, 32>}, {transform_indices = @transform_1, window_bounds = array<i64: 16, 32>}, {transform_indices = @transform_2, window_bounds = array<i64: 2, 2, 32>}, {pipeline_mode = #tpu.pipeline_mode<synchronous>, transform_indices = @transform_3, window_bounds = array<i64: 7, 32, 32>}, {pipeline_mode = #tpu.pipeline_mode<synchronous>, transform_indices = @transform_4, window_bounds = array<i64: 6, 32>}, {transform_indices = @transform_5, window_bounds = array<i64: 2, 40>}]} {
    %c0 = arith.constant 0 : index
    %c0_0 = arith.constant 0 : index
    %0 = vector.load %arg5[%c0, %c0_0] : memref<6x32xf32, #tpu.memory_space<vmem>>, vector<1x32xf32>
    %c1 = arith.constant 1 : index
    %c0_1 = arith.constant 0 : index
    %1 = vector.load %arg5[%c1, %c0_1] : memref<6x32xf32, #tpu.memory_space<vmem>>, vector<1x32xf32>
    %c2 = arith.constant 2 : index
    %c0_2 = arith.constant 0 : index
    %2 = vector.load %arg5[%c2, %c0_2] : memref<6x32xf32, #tpu.memory_space<vmem>>, vector<1x32xf32>
    %c3 = arith.constant 3 : index
    %c0_3 = arith.constant 0 : index
    %3 = vector.load %arg5[%c3, %c0_3] : memref<6x32xf32, #tpu.memory_space<vmem>>, vector<1x32xf32>
    %c4 = arith.constant 4 : index
    %c0_4 = arith.constant 0 : index
    %4 = vector.load %arg5[%c4, %c0_4] : memref<6x32xf32, #tpu.memory_space<vmem>>, vector<1x32xf32>
    %c5 = arith.constant 5 : index
    %c0_5 = arith.constant 0 : index
    %5 = vector.load %arg5[%c5, %c0_5] : memref<6x32xf32, #tpu.memory_space<vmem>>, vector<1x1xf32>
    %c0_6 = arith.constant 0 : index
    %c0_7 = arith.constant 0 : index
    %6 = vector.load %arg1[%c0_6, %c0_7] : memref<16x32xbf16, #tpu.memory_space<vmem>>, vector<16x32xbf16>
    %c0_8 = arith.constant 0 : index
    %c0_9 = arith.constant 0 : index
    %7 = vector.load %arg2[%c0_8, %c0_9] : memref<16x32xbf16, #tpu.memory_space<vmem>>, vector<16x32xbf16>
    %c0_10 = arith.constant 0 : index
    %c0_11 = arith.constant 0 : index
    %c0_12 = arith.constant 0 : index
    %8 = vector.load %arg3[%c0_10, %c0_11, %c0_12] : memref<2x2x32xbf16, #tpu.memory_space<vmem>>, vector<1x2x32xbf16>
    %9 = vector.shape_cast %8 : vector<1x2x32xbf16> to vector<2x32xbf16>
    %c1_13 = arith.constant 1 : index
    %c0_14 = arith.constant 0 : index
    %c0_15 = arith.constant 0 : index
    %10 = vector.load %arg3[%c1_13, %c0_14, %c0_15] : memref<2x2x32xbf16, #tpu.memory_space<vmem>>, vector<1x2x32xbf16>
    %11 = vector.shape_cast %10 : vector<1x2x32xbf16> to vector<2x32xbf16>
    %c0_16 = arith.constant 0 : index
    %c0_17 = arith.constant 0 : index
    %c0_18 = arith.constant 0 : index
    %12 = vector.load %arg4[%c0_16, %c0_17, %c0_18] : memref<7x32x32xf32, #tpu.memory_space<vmem>>, vector<1x32x32xf32>
    %13 = vector.shape_cast %12 : vector<1x32x32xf32> to vector<32x32xf32>
    %cst = arith.constant dense<0.000000e+00> : vector<16x32xf32>
    %14 = tpu.matmul %6, %13, %cst {dimension_numbers = #tpu.dot_dimension_numbers<[1], [0], [0], [1], [0, 0, 1, 1], [], []>} : vector<16x32xbf16>, vector<32x32xf32>, vector<16x32xf32> -> vector<16x32xf32>
    %c1_19 = arith.constant 1 : index
    %c0_20 = arith.constant 0 : index
    %c0_21 = arith.constant 0 : index
    %15 = vector.load %arg4[%c1_19, %c0_20, %c0_21] : memref<7x32x32xf32, #tpu.memory_space<vmem>>, vector<1x32x32xf32>
    %16 = vector.shape_cast %15 : vector<1x32x32xf32> to vector<32x32xf32>
    %cst_22 = arith.constant dense<0.000000e+00> : vector<16x32xf32>
    %17 = tpu.matmul %7, %16, %cst_22 {dimension_numbers = #tpu.dot_dimension_numbers<[1], [0], [0], [1], [0, 0, 1, 1], [], []>} : vector<16x32xbf16>, vector<32x32xf32>, vector<16x32xf32> -> vector<16x32xf32>
    %18 = arith.addf %14, %17 : vector<16x32xf32>
    %19 = vector.broadcast %0 : vector<1x32xf32> to vector<16x32xf32>
    %20 = arith.addf %18, %19 : vector<16x32xf32>
    %cst_23 = arith.constant 0.000000e+00 : f32
    %21 = vector.broadcast %cst_23 : f32 to vector<16x32xf32>
    %22 = arith.maximumf %20, %21 : vector<16x32xf32>
    %c3_24 = arith.constant 3 : index
    %c0_25 = arith.constant 0 : index
    %c0_26 = arith.constant 0 : index
    %23 = vector.load %arg4[%c3_24, %c0_25, %c0_26] : memref<7x32x32xf32, #tpu.memory_space<vmem>>, vector<1x32x32xf32>
    %24 = vector.shape_cast %23 : vector<1x32x32xf32> to vector<32x32xf32>
    %cst_27 = arith.constant dense<0.000000e+00> : vector<2x32xf32>
    %25 = tpu.matmul %9, %24, %cst_27 {dimension_numbers = #tpu.dot_dimension_numbers<[1], [0], [0], [1], [0, 0, 1, 1], [], []>} : vector<2x32xbf16>, vector<32x32xf32>, vector<2x32xf32> -> vector<2x32xf32>
    %c2_28 = arith.constant 2 : index
    %c0_29 = arith.constant 0 : index
    %c0_30 = arith.constant 0 : index
    %26 = vector.load %arg4[%c2_28, %c0_29, %c0_30] : memref<7x32x32xf32, #tpu.memory_space<vmem>>, vector<1x32x32xf32>
    %27 = vector.shape_cast %26 : vector<1x32x32xf32> to vector<32x32xf32>
    %cst_31 = arith.constant dense<0.000000e+00> : vector<16x32xf32>
    %28 = tpu.matmul %22, %27, %cst_31 {dimension_numbers = #tpu.dot_dimension_numbers<[1], [0], [0], [1], [0, 0, 1, 1], [], []>} : vector<16x32xf32>, vector<32x32xf32>, vector<16x32xf32> -> vector<16x32xf32>
    %29 = vector.shape_cast %28 : vector<16x32xf32> to vector<2x8x32xf32>
    %30 = vector.shape_cast %25 : vector<2x32xf32> to vector<2x1x32xf32>
    %31 = vector.broadcast %30 : vector<2x1x32xf32> to vector<2x8x32xf32>
    %32 = arith.addf %29, %31 : vector<2x8x32xf32>
    %33 = vector.shape_cast %1 : vector<1x32xf32> to vector<1x1x32xf32>
    %34 = vector.broadcast %33 : vector<1x1x32xf32> to vector<2x8x32xf32>
    %35 = arith.addf %32, %34 : vector<2x8x32xf32>
    %cst_32 = arith.constant 0.000000e+00 : f32
    %36 = vector.broadcast %cst_32 : f32 to vector<2x8x32xf32>
    %37 = arith.maximumf %35, %36 : vector<2x8x32xf32>
    %38 = vector.shape_cast %37 : vector<2x8x32xf32> to vector<16x32xf32>
    %c4_33 = arith.constant 4 : index
    %c0_34 = arith.constant 0 : index
    %c0_35 = arith.constant 0 : index
    %39 = vector.load %arg4[%c4_33, %c0_34, %c0_35] : memref<7x32x32xf32, #tpu.memory_space<vmem>>, vector<1x32x32xf32>
    %40 = vector.shape_cast %39 : vector<1x32x32xf32> to vector<32x32xf32>
    %cst_36 = arith.constant dense<0.000000e+00> : vector<16x32xf32>
    %41 = tpu.matmul %38, %40, %cst_36 {dimension_numbers = #tpu.dot_dimension_numbers<[1], [0], [0], [1], [0, 0, 1, 1], [], []>} : vector<16x32xf32>, vector<32x32xf32>, vector<16x32xf32> -> vector<16x32xf32>
    %42 = vector.broadcast %2 : vector<1x32xf32> to vector<16x32xf32>
    %43 = arith.addf %41, %42 : vector<16x32xf32>
    %cst_37 = arith.constant 0.000000e+00 : f32
    %44 = vector.broadcast %cst_37 : f32 to vector<16x32xf32>
    %45 = arith.maximumf %43, %44 : vector<16x32xf32>
    %c6 = arith.constant 6 : index
    %c0_38 = arith.constant 0 : index
    %c0_39 = arith.constant 0 : index
    %46 = vector.load %arg4[%c6, %c0_38, %c0_39] : memref<7x32x32xf32, #tpu.memory_space<vmem>>, vector<1x32x32xf32>
    %47 = vector.shape_cast %46 : vector<1x32x32xf32> to vector<32x32xf32>
    %cst_40 = arith.constant dense<0.000000e+00> : vector<2x32xf32>
    %48 = tpu.matmul %11, %47, %cst_40 {dimension_numbers = #tpu.dot_dimension_numbers<[1], [0], [0], [1], [0, 0, 1, 1], [], []>} : vector<2x32xbf16>, vector<32x32xf32>, vector<2x32xf32> -> vector<2x32xf32>
    %c5_41 = arith.constant 5 : index
    %c0_42 = arith.constant 0 : index
    %c0_43 = arith.constant 0 : index
    %49 = vector.load %arg4[%c5_41, %c0_42, %c0_43] : memref<7x32x32xf32, #tpu.memory_space<vmem>>, vector<1x32x32xf32>
    %50 = vector.shape_cast %49 : vector<1x32x32xf32> to vector<32x32xf32>
    %cst_44 = arith.constant dense<0.000000e+00> : vector<16x32xf32>
    %51 = tpu.matmul %45, %50, %cst_44 {dimension_numbers = #tpu.dot_dimension_numbers<[1], [0], [0], [1], [0, 0, 1, 1], [], []>} : vector<16x32xf32>, vector<32x32xf32>, vector<16x32xf32> -> vector<16x32xf32>
    %52 = vector.shape_cast %51 : vector<16x32xf32> to vector<2x8x32xf32>
    %53 = vector.shape_cast %48 : vector<2x32xf32> to vector<2x1x32xf32>
    %54 = vector.broadcast %53 : vector<2x1x32xf32> to vector<2x8x32xf32>
    %55 = arith.addf %52, %54 : vector<2x8x32xf32>
    %56 = vector.shape_cast %3 : vector<1x32xf32> to vector<1x1x32xf32>
    %57 = vector.broadcast %56 : vector<1x1x32xf32> to vector<2x8x32xf32>
    %58 = arith.addf %55, %57 : vector<2x8x32xf32>
    %cst_45 = arith.constant 0.000000e+00 : f32
    %59 = vector.broadcast %cst_45 : f32 to vector<2x8x32xf32>
    %60 = arith.maximumf %58, %59 : vector<2x8x32xf32>
    %61 = vector.shape_cast %4 : vector<1x32xf32> to vector<1x1x32xf32>
    %62 = vector.broadcast %61 : vector<1x1x32xf32> to vector<2x8x32xf32>
    %63 = arith.mulf %60, %62 : vector<2x8x32xf32>
    %cst_46 = arith.constant dense<0.000000e+00> : vector<2x8xf32>
    %64 = vector.multi_reduction <add>, %63, %cst_46 [2] : vector<2x8x32xf32> to vector<2x8xf32>
    %65 = vector.broadcast %5 : vector<1x1xf32> to vector<2x8xf32>
    %66 = arith.addf %64, %65 : vector<2x8xf32>
    %cst_47 = arith.constant dense<0xFF800000> : vector<2xf32>
    %67 = vector.multi_reduction <maximumf>, %66, %cst_47 [1] : vector<2x8xf32> to vector<2xf32>
    %68 = vector.shape_cast %67 : vector<2xf32> to vector<2x1xf32>
    %69 = vector.broadcast %68 : vector<2x1xf32> to vector<2x8xf32>
    %70 = arith.subf %66, %69 : vector<2x8xf32>
    %71 = math.exp %70 : vector<2x8xf32>
    %cst_48 = arith.constant dense<0.000000e+00> : vector<2xf32>
    %72 = vector.multi_reduction <add>, %71, %cst_48 [1] : vector<2x8xf32> to vector<2xf32>
    %73 = vector.shape_cast %72 : vector<2xf32> to vector<2x1xf32>
    %74 = tpu.reciprocal %73 {approx = true} : vector<2x1xf32> -> vector<2x1xf32>
    %75 = arith.mulf %73, %74 : vector<2x1xf32>
    %cst_49 = arith.constant 2.000000e+00 : f32
    %76 = vector.broadcast %cst_49 : f32 to vector<2x1xf32>
    %77 = arith.subf %76, %75 : vector<2x1xf32>
    %78 = arith.mulf %74, %77 : vector<2x1xf32>
    %79 = vector.broadcast %78 : vector<2x1xf32> to vector<2x8xf32>
    %80 = arith.mulf %71, %79 : vector<2x8xf32>
    %81 = vector.shape_cast %45 : vector<16x32xf32> to vector<2x8x32xf32>
    %82 = vector.shape_cast %80 : vector<2x8xf32> to vector<2x8x1xf32>
    %83 = vector.broadcast %82 : vector<2x8x1xf32> to vector<2x8x32xf32>
    %84 = arith.mulf %81, %83 : vector<2x8x32xf32>
    %cst_50 = arith.constant dense<0.000000e+00> : vector<2x32xf32>
    %85 = vector.multi_reduction <add>, %84, %cst_50 [1] : vector<2x8x32xf32> to vector<2x32xf32>
    %c0_51 = arith.constant 0 : index
    %c0_52 = arith.constant 0 : index
    %86 = vector.load %arg6[%c0_51, %c0_52] : memref<2x40xf32, #tpu.memory_space<vmem>>, vector<2x32xf32>
    tpu.vector_store %arg6[%c0_51, %c0_52], %85 {strides = array<i32>} : memref<2x40xf32, #tpu.memory_space<vmem>>, vector<2x32xf32>,
    %c0_53 = arith.constant 0 : index
    %c32 = arith.constant 32 : index
    %87 = vector.load %arg6[%c0_53, %c32] : memref<2x40xf32, #tpu.memory_space<vmem>>, vector<2x8xf32>
    tpu.vector_store %arg6[%c0_53, %c32], %80 {strides = array<i32>} : memref<2x40xf32, #tpu.memory_space<vmem>>, vector<2x8xf32>,
    return
  }
  func.func @transform_0(%arg0: i32) -> (i32, i32) {
    %c0_i32 = arith.constant 0 : i32
    %c0_i32_0 = arith.constant 0 : i32
    return %arg0, %c0_i32 : i32, i32
  }
  func.func @transform_1(%arg0: i32) -> (i32, i32) {
    %c0_i32 = arith.constant 0 : i32
    %c0_i32_0 = arith.constant 0 : i32
    return %arg0, %c0_i32 : i32, i32
  }
  func.func @transform_2(%arg0: i32) -> (i32, i32, i32) {
    %c0_i32 = arith.constant 0 : i32
    %c0_i32_0 = arith.constant 0 : i32
    %c0_i32_1 = arith.constant 0 : i32
    return %c0_i32, %arg0, %c0_i32_0 : i32, i32, i32
  }
  func.func @transform_3(%arg0: i32) -> (i32, i32, i32) {
    %c0_i32 = arith.constant 0 : i32
    %c0_i32_0 = arith.constant 0 : i32
    %c0_i32_1 = arith.constant 0 : i32
    %c0_i32_2 = arith.constant 0 : i32
    return %c0_i32, %c0_i32_0, %c0_i32_1 : i32, i32, i32
  }
  func.func @transform_4(%arg0: i32) -> (i32, i32) {
    %c0_i32 = arith.constant 0 : i32
    %c0_i32_0 = arith.constant 0 : i32
    %c0_i32_1 = arith.constant 0 : i32
    return %c0_i32, %c0_i32_0 : i32, i32
  }
  func.func @transform_5(%arg0: i32) -> (i32, i32) {
    %c0_i32 = arith.constant 0 : i32
    %c0_i32_0 = arith.constant 0 : i32
    return %arg0, %c0_i32 : i32, i32
  }
}

</mosaic_0001>

<bundles_post_ra>
// kernel: tpu_custom_call.1
= control target key start
LH: loop header
LB: loop body
LE: loop exit
PB: predicated region body
PF: predicated region fallthrough
CT: control target
= control target key end

     0   :  { %10 = vsyncpa [#allocation3], 0  ;;  %s1412_s0 = inlined_call_operand.hbm [shape: bf16[16,32], index: 0, kind: input, shape index: {}]   ;;  %s1413_s1 = inlined_call_operand.hbm [shape: bf16[16,32], index: 1, kind: input, shape index: {}]   ;;  %s1414_s2 = inlined_call_operand.vmem [shape: bf16[2,2,32], index: 2, kind: input, shape index: {}]   ;;  %s1415_s3 = inlined_call_operand.hbm [shape: f32[7,32,32], index: 3, kind: input, shape index: {}]   ;;  %s1416_s4 = inlined_call_operand.vmem [shape: f32[6,32], index: 4, kind: input, shape index: {}]   ;;  %s1417_s5 = inlined_call_operand.hbm [shape: f32[2,40], index: 5, kind: output, shape index: {}]  }
   0x1   :  { %11 = vsyncpa [#allocation6], 0 }
   0x2   :  { %12 = vsyncpa [#allocation4], 0  ;;  %s1223_s18 = smov [#allocation5]   ;;  %s1224_s20 = smov [#allocation2]  }
   0x3   :  { %s30_s19 = sshll.u32 %s1223_s18, 4  ;;  %s18_s21 = sshll.u32 %s1224_s20, 4  ;;  %s31_s19 = int_to_ptr.vmem [resolvable:$true] %s30_s19  ;;  %s1266_s21 = int_to_ptr.vmem [resolvable:$true] %s18_s21 }
   0x4   :  { %s1129_s24 = scalar_lea.hbm %s1413_s1, 128 }
   0x5   :  { %p1130_p0 = scmp.ne.s32.totalorder %s1413_s1, %s1129_s24  ;;  %p1133_p1 = scmp.lt.u32.totalorder %s1129_s24, %s1413_s1 }
   0x7   :  { %p1135_p2 = pnand %p1133_p1, %p1130_p0 }
   0x9   :  { %1138 = shalt.err (!%p1135_p2)
}
   0xa   :  { %s1139_s29 = scalar_lea.vmem %s31_s19, 128  ;;  %p1144_p4 = scmp.lt.s32.totalorder %s31_s19, %s31_s19 }
   0xb   :  { %p1140_p3 = scmp.ne.s32.totalorder %s31_s19, %s1139_s29  ;;  %p1145_p5 = scmp.lt.s32.totalorder %s1139_s29, %s1139_s29 }
   0xd   :  { %p1146_p6 = por %p1145_p5, %p1144_p4 }
   0xf   :  { %p1147_p7 = pnand %p1146_p6, %p1140_p3 }
  0x11   :  { %1150 = shalt.err (!%p1147_p7)
}
  0x12   :  { %s1225_s30 = smov 64   ;;  %s1226_s6 = smov 4  }
  0x13   :  { %36 = dma.hbm_to_vmem [thread:$0]  %s1413_s1, 128, %s31_s19, [#allocation6], %s1225_s30, %s1225_s30, %s1226_s6  }
  0x14   :  { %s1151_s11 = scalar_lea.hbm %s1412_s0, 128 }
  0x15   :  { %p1152_p8 = scmp.ne.s32.totalorder %s1412_s0, %s1151_s11  ;;  %p1155_p9 = scmp.lt.u32.totalorder %s1151_s11, %s1412_s0 }
  0x17   :  { %p1157_p10 = pnand %p1155_p9, %p1152_p8 }
  0x19   :  { %1160 = shalt.err (!%p1157_p10)
}
  0x1a   :  { %s1161_s16 = scalar_lea.vmem %s1266_s21, 128  ;;  %p1166_p12 = scmp.lt.s32.totalorder %s1266_s21, %s1266_s21 }
  0x1b   :  { %p1162_p11 = scmp.ne.s32.totalorder %s1266_s21, %s1161_s16  ;;  %p1167_p13 = scmp.lt.s32.totalorder %s1161_s16, %s1161_s16 }
  0x1d   :  { %p1168_p0 = por %p1167_p13, %p1166_p12 }
  0x1f   :  { %p1169_p1 = pnand %p1168_p0, %p1162_p11 }
  0x21   :  { %1172 = shalt.err (!%p1169_p1)
}
  0x22   :  { %24 = dma.hbm_to_vmem [thread:$0]  %s1412_s0, 128, %s1266_s21, [#allocation3], %s1225_s30, %s1225_s30, %s1226_s6  }
  0x23   :  { %s1227_s18 = smov [#allocation7]   ;;  %s1173_s23 = scalar_lea.hbm %s1415_s3, 3584 }
  0x24   :  { %s44_s19 = sshll.u32 %s1227_s18, 4  ;;  %p1174_p2 = scmp.ne.s32.totalorder %s1415_s3, %s1173_s23  ;;  %s45_s19 = int_to_ptr.vmem [resolvable:$true] %s44_s19 }
  0x25   :  { %p1177_p3 = scmp.lt.u32.totalorder %s1173_s23, %s1415_s3 }
  0x27   :  { %p1179_p4 = pnand %p1177_p3, %p1174_p2 }
  0x29   :  { %1182 = shalt.err (!%p1179_p4)
}
  0x2a   :  { %s1183_s28 = scalar_lea.vmem %s45_s19, 3584  ;;  %p1188_p6 = scmp.lt.s32.totalorder %s45_s19, %s45_s19 }
  0x2b   :  { %p1184_p5 = scmp.ne.s32.totalorder %s45_s19, %s1183_s28  ;;  %p1189_p7 = scmp.lt.s32.totalorder %s1183_s28, %s1183_s28 }
  0x2d   :  { %p1190_p8 = por %p1189_p7, %p1188_p6 }
  0x2f   :  { %p1191_p9 = pnand %p1190_p8, %p1184_p5 }
  0x31   :  { %1194 = shalt.err (!%p1191_p9)
}
  0x32   :  { %s1228_s0 = smov 128   ;;  %s1229_s21 = smov 8  }
  0x33   :  { %50 = dma.hbm_to_vmem [thread:$0]  %s1415_s3, 3584, %s45_s19, [#allocation6], %s1228_s0, %s1228_s0, %s1229_s21  }
  0x34   :  { %1217 = dma.done.wait [#allocation3], 128  }
  0x35   :  { %1218 = vsyncadd [#allocation3], 4294967168 }
  0x36   :  { %1219 = dma.done.wait [#allocation6], 3712  }
  0x37   :  { %1220 = vsyncadd [#allocation6], 4294963584  ;;  %v1230_v0 = vmov 0.0|0.0   ;;  %vm1231_vm0 = vmmov 0   ;;  %v1232_v1 = vmov 0.0   ;;  %v81_v2 = vld [vmem:[#allocation7 + $0x20] sm:$0xff] }
  0x38   :  { %1056 = vmatprep.subr.bf16.mxu0 %v1230_v0  ;;  %1062 = vmatprep.subr.bf16.mxu1 %v1230_v0  ;;  %v82_v3 = vld [vmem:[#allocation7 + $0x28] sm:$0xff]  ;;  %v76_v4 = vld [vmem:[#allocation7] sm:$0xff]  ;;  %v83_v7 = vld [vmem:[#allocation7 + $0x30] sm:$0xff]  ;;  %vm90_vm1 = vcmask 261120   ;;  %vm796_vm2 = vcmask 1041409   ;;  %vm799_vm3 = vcmask 58368  }
  0x39   :  { %983 = vmatprep.mubr.msk.bf16.mxu0 %vm1231_vm0, %v1232_v1  ;;  %995 = vmatprep.mubr.msk.bf16.mxu1 %vm1231_vm0, %v1232_v1  ;;  %v1057_v5 = vpack.c.bf16 %v82_v3, %v81_v2  ;;  %v77_v6 = vld [vmem:[#allocation7 + $0x8] sm:$0xff]  ;;  %v84_v8 = vld [vmem:[#allocation7 + $0x38] sm:$0xff]  ;;  %v78_v10 = vld [vmem:[#allocation7 + $0x10] sm:$0xff]  ;;  %v426_v3 = vlaneseq  ;;  %vm888_vm4 = vcmask 254976   ;;  %vm901_vm5 = vcmask 320768  }
  0x3a   :  { %v1063_v9 = vpack.c.bf16 %v77_v6, %v76_v4  ;;  %v79_v11 = vld [vmem:[#allocation7 + $0x18] sm:$0xff]  ;;  %v1060_v12 = vpack.c.bf16 %v84_v8, %v83_v7  ;;  %v257_v14 = vld [vmem:[#allocation7 + $0x60] sm:$0xff]  ;;  %v258_v15 = vld [vmem:[#allocation7 + $0x68] sm:$0xff] }
  0x3b   :  { %1058 = vmatpush3.bf16.msra.mxu0 %v1057_v5  ;;  %v1066_v13 = vpack.c.bf16 %v79_v11, %v78_v10  ;;  %v1121_v16 = vld [vmem:[#allocation5] sm:$0xff]   ;;  %v1122_v17 = vld [vmem:[#allocation2] sm:$0xff]   ;;  %v1069_v18 = vpack.c.bf16 %v258_v15, %v257_v14  ;;  %v337_v22 = vld [vmem:[#allocation7 + $0x40] sm:$0xff]  ;;  %v1341_v5 = vshrl.u32 %v426_v3, 7 }
  0x3c   :  { %1064 = vmatpush3.bf16.msra.mxu1 %v1063_v9  ;;  %1059 = vmatprep.subr.bf16.mxu0 %v1230_v0  ;;  %v259_v19 = vld [vmem:[#allocation7 + $0x70] sm:$0xff]  ;;  %v260_v20 = vld [vmem:[#allocation7 + $0x78] sm:$0xff]  ;;  %v338_v23 = vld [vmem:[#allocation7 + $0x48] sm:$0xff] }
  0x3d   :  { %1065 = vmatprep.subr.bf16.mxu1 %v1230_v0  ;;  %v1072_v21 = vpack.c.bf16 %v260_v20, %v259_v19  ;;  %v73_v24 = vld [vmem:[%s1414_s2] sm:$0x1]  ;;  %v1074_v25 = vpack.c.bf16 %v338_v23, %v337_v22  ;;  %v340_v27 = vld [vmem:[#allocation7 + $0x58] sm:$0xff]  ;;  %v466_v48 = vld [vmem:[#allocation7 + $0x80] sm:$0xff]  ;;  %v1345_v9 = vsub.s32 0, %v1341_v5 }
  0x3e   :  { %v339_v26 = vld [vmem:[#allocation7 + $0x50] sm:$0xff]  ;;  %v467_v49 = vld [vmem:[#allocation7 + $0x88] sm:$0xff]  ;;  %v469_v52 = vld [vmem:[#allocation7 + $0x98] sm:$0xff] }
  0x3f   :  { %1061 = vmatpush3.bf16.msra.mxu0 %v1060_v12  ;;  %v1078_v28 = vpack.c.bf16 %v340_v27, %v339_v26  ;;  %v924_v30 = vld [vmem:[%s1416_s4] ss:$0 sm:$0xff]  ;;  %v1082_v50 = vpack.c.bf16 %v467_v49, %v466_v48  ;;  %v558_v54 = vld [vmem:[#allocation7 + $0xc0] sm:$0xff]  ;;  %v559_v55 = vld [vmem:[#allocation7 + $0xc8] sm:$0xff] }
  0x40   :  { %1067 = vmatpush3.bf16.msra.mxu1 %v1066_v13  ;;  %1068 = vmatprep.subr.bf16.mxu0 %v1230_v0  ;;  %v468_v51 = vld [vmem:[#allocation7 + $0x90] sm:$0xff]  ;;  %v1091_v57 = vpack.c.bf16 %v559_v55, %v558_v54  ;;  %v561_v58 = vld [vmem:[#allocation7 + $0xd8] sm:$0xff]  ;;  %v638_v59 = vld [vmem:[#allocation7 + $0xa0] sm:$0xff] }
  0x41   :  { %1075 = vmatprep.subr.bf16.mxu1 %v1074_v25  ;;  %v1086_v53 = vpack.c.bf16 %v469_v52, %v468_v51  ;;  %v560_v56 = vld [vmem:[#allocation7 + $0xd0] sm:$0xff]  ;;  %v639_v60 = vld [vmem:[#allocation7 + $0xa8] sm:$0xff]  ;;  %v641_v23 = vld [vmem:[#allocation7 + $0xb8] sm:$0xff] }
  0x42   :  { %984 = vmatmul.mubr.msk.bf16.vlgmr.msra.gmra.mrb[0].mxu0 %vm90_vm1, %v1121_v16  ;;  %v1094_v61 = vpack.c.bf16 %v561_v58, %v560_v56  ;;  %v1096_v62 = vpack.c.bf16 %v639_v60, %v638_v59  ;;  %v919_v63 = vld [vmem:[%s1414_s2 + $0x1] sm:$0x1] }
  0x43   :  { %996 = vmatmul.mubr.msk.bf16.vlgmr.msra.gmra.mrb[0].mxu1 %vm90_vm1, %v1122_v17  ;;  %1070 = vmatpush3.bf16.msra.mxu0 %v1069_v18  ;;  %v928_v13 = vld [vmem:[%s1416_s4 + $0x1] ss:$0 sm:$0xff] }
  0x44   :  { %1071 = vmatprep.subr.bf16.mxu0 %v1230_v0  ;;  %1007 = vmatprep.mubr.msk.bf16.mxu0 %vm1231_vm0, %v1232_v1  ;;  %v640_v22 = vld [vmem:[#allocation7 + $0xb0] sm:$0xff] }
  0x45   :  { %1077 = vmatpush3.bf16.msra.mxu1 %v1074_v25 }
  0x46   :  { %1079 = vmatprep.subr.bf16.mxu1 %v1078_v28 }
  0x47   :  { %1073 = vmatpush3.bf16.msra.mxu0 %v1072_v21 }
  0x48   :  { %1083 = vmatprep.subr.bf16.mxu0 %v1082_v50 }
  0x49   :  { %1081 = vmatpush3.bf16.msra.mxu1 %v1078_v28 }
  0x4a   :  { %1008 = vmatmul.mubr.msk.bf16.vlgmr.msra.gmra.mrb[4].mxu0 %vm90_vm1, %v73_v24  ;;  %1090 = vmatprep.subr.bf16.mxu1 %v1230_v0  ;;  %v1100_v24 = vpack.c.bf16 %v641_v23, %v640_v22 }
  0x4b   :  { %1085 = vmatpush3.bf16.msra.mxu0 %v1082_v50  ;;  %v936_v50 = vld [vmem:[%s1416_s4 + $0x4] ss:$0 sm:$0xff] }
  0x4c   :  { %1087 = vmatprep.subr.bf16.mxu0 %v1086_v53 }
  0x4f   :  { %1089 = vmatpush3.bf16.msra.mxu0 %v1086_v53 }
  0x50   :  { %1097 = vmatprep.subr.bf16.mxu0 %v1096_v62 }
 0x115   :  { %v160_v29 = vpop.f32.mrb[0].mxu0 }
 0x116   :  { %v241_v31 = vpop.f32.mrb[0].mxu1  ;;  %v985_v32 = vpop.f32.mrb[1].mxu0 }
 0x117   :  { %v242_v33 = vadd.f32 %v241_v31, %v160_v29  ;;  %v997_v34 = vpop.f32.mrb[1].mxu1  ;;  %v163_v35 = vpop.f32.mrb[2].mxu0  ;;  %v929_v29 = vld [vmem:[%s1416_s4 + $0x2] ss:$0 sm:$0xff] }
 0x118   :  { %v244_v36 = vpop.f32.mrb[2].mxu1  ;;  %v986_v37 = vpop.f32.mrb[3].mxu0 }
 0x119   :  { %v252_v38 = vadd.f32 %v924_v30, %v242_v33  ;;  %v245_v39 = vadd.f32 %v244_v36, %v163_v35  ;;  %v998_v40 = vpop.f32.mrb[3].mxu1  ;;  %v68_v36 = vld [vmem:[%s1416_s4 + $0x5] sm:$0x1] }
 0x11a   :  { %1104 = vpush %v68_v36 }
 0x11b   :  { %v254_v41 = vmax.f32 %v252_v38, 0.0  ;;  %v253_v42 = vadd.f32 %v924_v30, %v245_v39 }
 0x11d   :  { %v255_v43 = vmax.f32 %v253_v42, 0.0  ;;  %1019 = vmatprep.mubr.msk.f32.mxu1 %vm90_vm1, %v254_v41  ;;  %v330_v44 = vpop.f32.mrb[4].mxu0 }
 0x11e   :  { %v1009_v45 = vpop.f32.mrb[5].mxu0 }
 0x11f   :  { %1020 = vmatmul.mubr.msk.f32.vlgmr.msra.gmra.mrb[4].mxu1 %vm90_vm1, %v255_v43  ;;  %v333_v46 = vpop.f32.mrb[6].mxu0  ;;  %v935_v43 = vld [vmem:[%s1416_s4 + $0x3] ss:$0 sm:$0xff]  ;;  %s1235_s4 = smov [#allocation8]  }
 0x120   :  { %1041 = vmatprep.mubr.msk.bf16.mxu1 %vm1231_vm0, %v1232_v1  ;;  %v1010_v47 = vpop.f32.mrb[7].mxu0  ;;  %1092 = vmatpush3.bf16.msra.mxu1 %v1091_v57  ;;  %v1233_v1 = vmov 1966171168   ;;  %v787_v57 = vand.u32 127, %v426_v3  ;;  %v810_v3 = vsub.s32 1, %v1341_v5  ;;  %s909_s20 = sshll.u32 %s1235_s4, 4  ;;  %s910_s20 = int_to_ptr.vmem [resolvable:$true] %s909_s20 }
 0x121   :  { %1093 = vmatprep.subr.bf16.mxu1 %v1230_v0  ;;  %v424_v2 = vunpack.c.l.s4 %v1233_v1  ;;  %s1195_s22 = scalar_lea.vmem %s910_s20, 32  ;;  %p1200_p11 = scmp.lt.s32.totalorder %s910_s20, %s910_s20 }
 0x122   :  { %v790_v60 = vsub.s32 %v787_v57, %v1341_v5  ;;  %p1196_p10 = scmp.ne.s32.totalorder %s910_s20, %s1195_s22  ;;  %p1201_p12 = scmp.lt.s32.totalorder %s1195_s22, %s1195_s22 }
 0x123   :  { %v425_v4 = vunpack.c.0.s8 %v424_v2 }
 0x124   :  { %1095 = vmatpush3.bf16.msra.mxu1 %v1094_v61  ;;  %p1202_p13 = por %p1201_p12, %p1200_p11 }
 0x125   :  { %v428_v6 = vsub.s32 %v425_v4, %v1341_v5 }
 0x126   :  { %p1203_p0 = pnand %p1202_p13, %p1196_p10 }
 0x127   :  { %1042 = vmatmul.mubr.msk.bf16.vlgmr.msra.gmra.mrb[8].mxu1 %vm90_vm1, %v919_v63  ;;  %v429_v7 = vrot.slane %v330_v44, %v428_v6 }
 0x129   :  { %v430_v8 = vcombine.high %v429_v7, %v429_v7  ;;  %v437_v10 = vrot.slane %v429_v7, %v428_v6  ;;  %v1234_v7 = vmov 0  }
 0x12a   :  { %1120 = vset.pattern.permute.xlu0 %v1234_v7  ;;  %1119 = vset.pattern.permute.xlu1 %v1234_v7 }
 0x12b   :  { %v444_v0 = vrot.slane %v430_v8, %v428_v6  ;;  %v448_v12 = vrot.slane %v437_v10, %v1345_v9 }
 0x12d   :  { %v452_v11 = vrot.slane %v444_v0, %v1345_v9 }
 0x14b   :  { %s1105_s19 = spop %1104 }
 0x14c   :  { %v780_v58 = vstv %s1105_s19 }
 0x1f2   :  { %v1021_v14 = vpop.f32.mrb[4].mxu1 }
 0x1f3   :  { %v456_v15 = vadd.f32 %v1021_v14, %v452_v11  ;;  %v413_v16 = vpop.f32.mrb[5].mxu1 }
 0x1f4   :  { %v455_v17 = vadd.f32 %v448_v12, %v413_v16 }
 0x1f5   :  { %v462_v18 = vadd.f32 %v928_v13, %v456_v15 }
 0x1f6   :  { %v461_v19 = vadd.f32 %v928_v13, %v455_v17 }
 0x1f7   :  { %v464_v21 = vmax.f32 %v462_v18, 0.0 }
 0x1f8   :  { %v463_v20 = vmax.f32 %v461_v19, 0.0 }
 0x1fa   :  { %1030 = vmatprep.mubr.msk.f32.mxu0 %vm90_vm1, %v463_v20  ;;  %v631_v25 = vpop.f32.mrb[8].mxu1 }
 0x1fb   :  { %1031 = vmatmul.mubr.msk.f32.vlgmr.msra.gmra.mrb[8].mxu0 %vm90_vm1, %v464_v21  ;;  %v1043_v26 = vpop.f32.mrb[9].mxu1  ;;  %v730_v37 = vrot.slane %v631_v25, %v428_v6 }
 0x1fc   :  { %1099 = vmatpush3.bf16.msra.mxu0 %v1096_v62  ;;  %v634_v27 = vpop.f32.mrb[10].mxu1 }
 0x1fd   :  { %1101 = vmatprep.subr.bf16.mxu0 %v1100_v24  ;;  %v1044_v28 = vpop.f32.mrb[11].mxu1  ;;  %v731_v38 = vcombine.high %v730_v37, %v730_v37  ;;  %v738_v40 = vrot.slane %v730_v37, %v428_v6 }
 0x1ff   :  { %v745_v39 = vrot.slane %v731_v38, %v428_v6  ;;  %v749_v42 = vrot.slane %v738_v40, %v1345_v9 }
 0x200   :  { %1103 = vmatpush3.bf16.msra.mxu0 %v1100_v24 }
 0x201   :  { %v753_v41 = vrot.slane %v745_v39, %v1345_v9 }
 0x2ce   :  { %v1032_v30 = vpop.f32.mrb[8].mxu0 }
 0x2cf   :  { %v1357_v31 = vadd.f32 %v1032_v30, %v929_v29  ;;  %v546_v32 = vpop.f32.mrb[9].mxu0 }
 0x2d0   :  { %v1359_v33 = vadd.f32 %v929_v29, %v546_v32 }
 0x2d1   :  { %v556_v35 = vmax.f32 %v1357_v31, 0.0 }
 0x2d2   :  { %v555_v34 = vmax.f32 %v1359_v33, 0.0 }
 0x2d4   :  { %1053 = vmatprep.mubr.msk.f32.mxu0 %vm90_vm1, %v555_v34 }
 0x2d5   :  { %1054 = vmatmul.mubr.msk.f32.vlgmr.msra.gmra.mrb[10].mxu0 %vm90_vm1, %v556_v35 }
 0x3a8   :  { %v1055_v44 = vpop.f32.mrb[10].mxu0 }
 0x3a9   :  { %v757_v45 = vadd.f32 %v1055_v44, %v753_v41  ;;  %v714_v46 = vpop.f32.mrb[11].mxu0 }
 0x3aa   :  { %v756_v47 = vadd.f32 %v749_v42, %v714_v46 }
 0x3ab   :  { %v763_v48 = vadd.f32 %v935_v43, %v757_v45 }
 0x3ac   :  { %v762_v49 = vadd.f32 %v935_v43, %v756_v47  ;;  %v890_v47 = vadd.s32 4294967264, %v787_v57 }
 0x3ad   :  { %v765_v51 = vmax.f32 %v763_v48, 0.0 }
 0x3ae   :  { %v764_v52 = vmax.f32 %v762_v49, 0.0  ;;  %v893_v33 = vsub.s32 %v890_v47, %v1341_v5 }
 0x3af   :  { %v771_v55 = vmul.f32 %v936_v50, %v765_v51 }
 0x3b0   :  { %v770_v53 = vmul.f32 %v936_v50, %v764_v52 }
 0x3b1   :  { %v775_v56 = vsel %vm90_vm1, %v771_v55, 0.0 }
 0x3b2   :  { %v772_v54 = vsel %vm90_vm1, %v770_v53, 0.0 }
 0x3b3   :  { %773 = vadd.xlane.f32.xlu0 %v772_v54 }
 0x3b7   :  { %776 = vadd.xlane.f32.xlu0 %v775_v56 }
 0x440   :  { %v774_v59 = vpop.xlane.xlu0 %773 }
 0x441   :  { %v782_v61 = vadd.f32 %v780_v58, %v774_v59 }
 0x443   :  { %v791_v1 = vrot.slane %v782_v61, %v790_v60 }
 0x444   :  { %v777_v62 = vpop.xlane.xlu0 %776 }
 0x445   :  { %v783_v63 = vadd.f32 %v780_v58, %v777_v62 }
 0x447   :  { %v795_v2 = vrot.slane %v783_v63, %v790_v60 }
 0x449   :  { %v797_v4 = vsel %vm796_vm2, %v795_v2, %v791_v1 }
 0x44a   :  { %v800_v6 = vsel %vm799_vm3, %v797_v4, -inf }
 0x44b   :  { %801 = vmax.xlane.f32.xlu1 %v800_v6 }
 0x4d8   :  { %v802_v8 = vpop.xlane.xlu1 %801 }
 0x4d9   :  { %v807_v0 = vrot.slane %v802_v8, %v1345_v9  ;;  %v811_v10 = vrot.slane %v802_v8, %v810_v3 }
 0x4db   :  { %v814_v11 = vsub.f32 %v782_v61, %v807_v0  ;;  %v815_v12 = vsub.f32 %v783_v63, %v811_v10 }
 0x4dd   :  { %v816_v13 = vmul.f32 1.442695, %v814_v11  ;;  %v818_v14 = vmul.f32 1.442695, %v815_v12 }
 0x4df   :  { %1123 = vpow2.f32 %v816_v13 }
 0x4e0   :  { %1125 = vpow2.f32 %v818_v14 }
 0x4e9   :  { %v1124_v15 = vpop.eup %1123 }
 0x4ea   :  { %v1126_v16 = vpop.eup %1125  ;;  %823 = vperm.xlu1 %1119, %v1124_v15  }
 0x4eb   :  { %826 = vperm.xlu0 %1120, %v1126_v16  }
 0x569   :  { %v824_v17 = vpop.permute.xlu1 %823 }
 0x56a   :  { %v827_v18 = vpop.permute.xlu0 %826  ;;  %v831_v19 = vrot.slane %v824_v17, %v790_v60 }
 0x56b   :  { %v835_v20 = vrot.slane %v827_v18, %v790_v60 }
 0x56d   :  { %v836_v21 = vsel %vm796_vm2, %v835_v20, %v831_v19 }
 0x56e   :  { %v838_v22 = vsel %vm799_vm3, %v836_v21, 0.0 }
 0x56f   :  { %839 = vadd.xlane.f32.xlu1 %v838_v22 }
 0x5fc   :  { %v840_v23 = vpop.xlane.xlu1 %839 }
 0x5fd   :  { %1127 = vrcp.f32 %v840_v23 }
 0x607   :  { %v1128_v24 = vpop.eup %1127 }
 0x608   :  { %v842_v25 = vmul.f32 %v1128_v24, %v840_v23 }
 0x60a   :  { %v843_v26 = vsub.f32 2.0, %v842_v25 }
 0x60c   :  { %v844_v27 = vmul.f32 %v1128_v24, %v843_v26 }
 0x60e   :  { %v849_v28 = vrot.slane %v844_v27, %v1345_v9  ;;  %v853_v29 = vrot.slane %v844_v27, %v810_v3 }
 0x610   :  { %v856_v30 = vmul.f32 %v1124_v15, %v849_v28  ;;  %v857_v32 = vmul.f32 %v1126_v16, %v853_v29 }
 0x612   :  { %860 = vperm.xlu0 %1120, %v856_v30  }
 0x616   :  { %865 = vperm.xlu0 %1120, %v857_v32  }
 0x691   :  { %v861_v36 = vpop.permute.xlu0 %860 }
 0x692   :  { %v868_v37 = vmul.f32 %v861_v36, %v555_v34 }
 0x694   :  { %v870_v38 = vsel %vm90_vm1, %v868_v37, 0.0 }
 0x695   :  { %v871_v39 = vrot.slane %v870_v38, 4  ;;  %v866_v40 = vpop.permute.xlu0 %865 }
 0x696   :  { %v869_v41 = vmul.f32 %v866_v40, %v556_v35  ;;  %v898_v51 = vrot.slane %v866_v40, %v893_v33  ;;  %v894_v35 = vrot.slane %v861_v36, %v893_v33 }
 0x697   :  { %v872_v42 = vadd.f32 %v871_v39, %v870_v38 }
 0x698   :  { %v877_v43 = vsel %vm90_vm1, %v869_v41, 0.0  ;;  %v899_v54 = vsel %vm796_vm2, %v898_v51, %v894_v35 }
 0x699   :  { %v873_v9 = vrot.slane %v872_v42, 2  ;;  %v878_v44 = vrot.slane %v877_v43, 4 }
 0x69b   :  { %v874_v45 = vadd.f32 %v873_v9, %v872_v42  ;;  %v879_v46 = vadd.f32 %v878_v44, %v877_v43 }
 0x69d   :  { %v880_v48 = vrot.slane %v879_v46, 2  ;;  %v875_v49 = vrot.slane %v874_v45, 1 }
 0x69f   :  { %v881_v50 = vadd.f32 %v880_v48, %v879_v46  ;;  %v876_v52 = vadd.f32 %v875_v49, %v874_v45 }
 0x6a1   :  { %v882_v34 = vrot.slane %v881_v50, 1 }
 0x6a3   :  { %v883_v31 = vadd.f32 %v882_v34, %v881_v50 }
 0x6a5   :  { %v886_v53 = vsel %vm796_vm2, %v883_v31, %v876_v52 }
 0x6a6   :  { %889 = vst.msk [vmem:[#allocation8] sm:$0x3] %vm888_vm4, %v886_v53 }
 0x6a7   :  { %902 = vst.msk [vmem:[#allocation8] sm:$0x3] %vm901_vm5, %v899_v54 }
 0x6a8   :  { %1206 = shalt.err (!%p1203_p0)
}
 0x6a9   :  { %s1207_s25 = scalar_lea.hbm %s1417_s5, 32 }
 0x6aa   :  { %p1208_p1 = scmp.ne.s32.totalorder %s1417_s5, %s1207_s25  ;;  %p1211_p2 = scmp.lt.u32.totalorder %s1207_s25, %s1417_s5 }
 0x6ac   :  { %p1213_p3 = pnand %p1211_p2, %p1208_p1 }
 0x6ae   :  { %1216 = shalt.err (!%p1213_p3)
}
 0x6af   :  { %912 = dma.vmem_to_hbm [thread:$0]  %s910_s20, 32, %s1417_s5, [#allocation4]  }
 0x6b0   :  { %1221 = dma.done.wait [#allocation4], 32  }
 0x6b1   :  { %1222 = vsyncadd [#allocation4], 4294967264 }
 0x6b2   :  { %916 = vsyncpa [#allocation3], 1 }
 0x6b3   :  { %917 = vsyncpa [#allocation6], 1 }
 0x6b4   :  { %918 = vsyncpa [#allocation4], 1 }

</bundles_post_ra>
